<compile_context>
chip_gen: v6e
topology: v6e:2x2x1
jax: 0.10.0
libtpu: 0.0.40
codegen_flags: <defaults>
</compile_context>

<pallas_src>
import jax
import jax.numpy as jnp
from jax.experimental import pallas as pl
from jax.experimental.pallas import tpu as pltpu

LANES = 128
TARGET_BLOCK_BYTES = 2 * 1024 * 1024  # ~2 MiB per block buffer


def _mish_kernel(x_ref, o_ref):
    x = x_ref[...].astype(jnp.float32)
    t = jnp.exp(-jnp.abs(x))          # single transcendental per element (EUP)
    t2 = t * t
    two_t = t + t
    pos = x >= 0.0
    num = jnp.where(pos, 1.0 + two_t, t2 + two_t)
    den = num + jnp.where(pos, t2 + t2, 2.0)
    o_ref[...] = (x * (num / den)).astype(o_ref.dtype)


def _round_up(a, b):
    return ((a + b - 1) // b) * b


def _sublane_multiple(dtype):
    itemsize = jnp.dtype(dtype).itemsize
    if itemsize >= 4:
        return 8
    if itemsize == 2:
        return 16
    return 32


def mish_forward(x):
    """Elementwise Mish via a lane-dense tiled Pallas kernel. Any shape/dtype."""
    orig_shape = x.shape
    dtype = x.dtype
    total = int(x.size)
    if total == 0:
        return x

    itemsize = jnp.dtype(dtype).itemsize
    sub = _sublane_multiple(dtype)

    # Lane-dense (rows, 128) slab; pad only to lane/sublane alignment.
    rows = pl.cdiv(total, LANES)
    rows_padded = _round_up(rows, sub)
    padded_total = rows_padded * LANES

    x_flat = x.reshape(-1)
    needs_pad = padded_total != total
    if needs_pad:
        x_flat = jnp.pad(x_flat, (0, padded_total - total))
    x2d = x_flat.reshape(rows_padded, LANES)

    # Block sizing: ~TARGET_BLOCK_BYTES per buffer, rounded to the sublane
    # multiple; aim for >= 2 grid blocks so both v7x TensorCores get work.
    target_rows = max(sub, (TARGET_BLOCK_BYTES // (LANES * itemsize)) // sub * sub)
    if rows_padded > sub:
        half_rows = _round_up(pl.cdiv(rows_padded, 2), sub)
        block_rows = min(target_rows, half_rows)
    else:
        block_rows = sub
    block_rows = min(block_rows, rows_padded)

    grid = (pl.cdiv(rows_padded, block_rows),)

    cost = pl.CostEstimate(
        flops=12 * padded_total,
        transcendentals=padded_total,
        bytes_accessed=2 * padded_total * itemsize,
    )

    out2d = pl.pallas_call(
        _mish_kernel,
        out_shape=jax.ShapeDtypeStruct((rows_padded, LANES), dtype),
        grid=grid,
        in_specs=[pl.BlockSpec((block_rows, LANES), lambda i: (i, 0))],
        out_specs=pl.BlockSpec((block_rows, LANES), lambda i: (i, 0)),
        compiler_params=pltpu.CompilerParams(
            dimension_semantics=("parallel",)),
        cost_estimate=cost,
    )(x2d)

    out_flat = out2d.reshape(padded_total)
    if needs_pad:
        out_flat = out_flat[:total]
    return out_flat.reshape(orig_shape)


def mish_reference(x):
    """Pure-JAX reference: x * tanh(softplus(x))."""
    xf = x.astype(jnp.float32)
    return (xf * jnp.tanh(jax.nn.softplus(xf))).astype(x.dtype)


if __name__ == "__main__":
    # Small shape consistent with the module's usage: x of shape (2, 4, 16, 16).
    N, C, H, W = 2, 4, 16, 16
    key = jax.random.PRNGKey(0)
    x = jax.random.normal(key, (N, C, H, W), dtype=jnp.float32) * 3.0

    out = mish_forward(x)
    out = jax.block_until_ready(out)

    ref = mish_reference(x)
    ref = jax.block_until_ready(ref)

    max_err = float(jnp.max(jnp.abs(out - ref)))
    assert out.shape == (N, C, H, W), out.shape
    # Rational form vs. tanh(softplus(x)) differ only by a few f32 ULPs.
    assert max_err < 2e-5, f"mismatch vs reference, max_err={max_err}"

    print("KERNEL_OK")
</pallas_src>

<mosaic_0001>
module attributes {stable_mosaic.version = 11 : i64} {
  func.func @_mish_kernel(%arg0: i32, %arg1: memref<8x128xf32, #tpu.memory_space<vmem>>, %arg2: memref<8x128xf32, #tpu.memory_space<vmem>>) attributes {dimension_semantics = [#tpu.dimension_semantics<parallel>], iteration_bounds = array<i64: 2>, scalar_prefetch = 0 : i64, scratch_operands = 0 : i64, tpu.core_type = #tpu.core_type<tc>, window_params = [{transform_indices = @transform_0, window_bounds = array<i64: 8, 128>}, {transform_indices = @transform_1, window_bounds = array<i64: 8, 128>}]} {
    %c0 = arith.constant 0 : index
    %c0_0 = arith.constant 0 : index
    %0 = vector.load %arg1[%c0, %c0_0] : memref<8x128xf32, #tpu.memory_space<vmem>>, vector<8x128xf32>
    %1 = math.absf %0 : vector<8x128xf32>
    %cst = arith.constant 0.000000e+00 : f32
    %2 = vector.broadcast %cst : f32 to vector<8x128xf32>
    %3 = arith.subf %2, %1 : vector<8x128xf32>
    %4 = math.exp %3 : vector<8x128xf32>
    %5 = arith.mulf %4, %4 : vector<8x128xf32>
    %6 = arith.addf %4, %4 : vector<8x128xf32>
    %cst_1 = arith.constant 0.000000e+00 : f32
    %7 = vector.broadcast %cst_1 : f32 to vector<8x128xf32>
    %8 = arith.cmpf oge, %0, %7 : vector<8x128xf32>
    %cst_2 = arith.constant 1.000000e+00 : f32
    %9 = vector.broadcast %cst_2 : f32 to vector<8x128xf32>
    %10 = arith.addf %9, %6 : vector<8x128xf32>
    %11 = arith.addf %5, %6 : vector<8x128xf32>
    %12 = arith.select %8, %10, %11 : vector<8x128xi1>, vector<8x128xf32>
    %13 = arith.addf %5, %5 : vector<8x128xf32>
    %cst_3 = arith.constant 2.000000e+00 : f32
    %14 = vector.broadcast %cst_3 : f32 to vector<8x128xf32>
    %15 = arith.select %8, %13, %14 : vector<8x128xi1>, vector<8x128xf32>
    %16 = arith.addf %12, %15 : vector<8x128xf32>
    %17 = arith.divf %12, %16 : vector<8x128xf32>
    %18 = arith.mulf %0, %17 : vector<8x128xf32>
    %c0_4 = arith.constant 0 : index
    %c0_5 = arith.constant 0 : index
    %19 = vector.load %arg2[%c0_4, %c0_5] : memref<8x128xf32, #tpu.memory_space<vmem>>, vector<8x128xf32>
    tpu.vector_store %arg2[%c0_4, %c0_5], %18 {strides = array<i32>} : memref<8x128xf32, #tpu.memory_space<vmem>>, vector<8x128xf32>,
    return
  }
  func.func @transform_0(%arg0: i32) -> (i32, i32) {
    %c0_i32 = arith.constant 0 : i32
    %c0_i32_0 = arith.constant 0 : i32
    return %arg0, %c0_i32 : i32, i32
  }
  func.func @transform_1(%arg0: i32) -> (i32, i32) {
    %c0_i32 = arith.constant 0 : i32
    %c0_i32_0 = arith.constant 0 : i32
    return %arg0, %c0_i32 : i32, i32
  }
}

</mosaic_0001>

<bundles_post_ra>
// kernel: tpu_custom_call.1
= control target key start
LH: loop header
LB: loop body
LE: loop exit
PB: predicated region body
PF: predicated region fallthrough
CT: control target
= control target key end

     0   :  { %6 = vsyncpa [#allocation3], 0  ;;  %s543_s0 = inlined_call_operand.hbm [shape: f32[16,128], index: 0, kind: input, shape index: {}]   ;;  %s544_s1 = inlined_call_operand.hbm [shape: f32[16,128], index: 1, kind: output, shape index: {}]  }
   0x1   :  { %8 = vsyncpa [#allocation3 + $0x1], 0 }
   0x2   :  { %9 = vsyncpa [#allocation4], 0 }
   0x3   :  { %11 = vsyncpa [#allocation4 + $0x1], 0  ;;  %s402_s6 = smov 0   ;;  %s404_s7 = smov 0  }
   0x4   :  { %s406_s8 = smov 0   ;;  %s408_s9 = smov 0  }
   0x5 LB: > { %s423_s10 = sadd.s32 4294967295, %s388_s9   ;;  %s234_s11 = sadd.s32 4294967294, %s388_s9   ;;  %s388_s9 = sphi %s408_s9, %s561_s9   ;;  %s384_s8 = sphi %s406_s8, %s560_s8   ;;  %s380_s7 = sphi %s404_s7, %s559_s7   ;;  %s376_s6 = sphi %s402_s6, %s558_s6  }
   0x6   : > { %s427_s12 = sadd.s32 1, %s388_s9   ;;  %s24_s13 = sadd.s32 1, %s384_s8 }
   0x7   : > { %s21_s14 = ssub.s32 %s388_s9, %s427_s12  ;;  %p31_p0 = scmp.ne.s32.totalorder %s384_s8, %s380_s7 }
   0x8   : > { %p22_p1 = scmp.eq.s32.totalorder %s21_s14, 0  ;;  %p32_p2 = scmp.eq.s32.totalorder %s388_s9, 0 }
   0x9   : > { %p37_p3 = scmp.ne.s32.totalorder %s380_s7, %s376_s6  ;;  %p38_p4 = scmp.eq.s32.totalorder %s423_s10, 0 }
   0xa   : > { %s439_s15 = scalar_select %p22_p1, %s384_s8, %s24_s13  }
   0xb   : > { %p441_p5 = por %p32_p2, %p31_p0  ;;  %p445_p6 = por %p38_p4, %p37_p3 }
   0xc   : > { %p61_p7 = scmp.eq.s32.totalorder %s423_s10, 1  ;;  %p67_p8 = scmp.eq.s32.totalorder %s234_s11, 1 }
   0xd   : > { %s548_s17 = scalar_select %p445_p6, 1, 0 }
   0xe   : > { %p258_p10 = scmp.lt.s32.totalorder %s388_s9, 2  ;;  %p452_p11 = por %p61_p7, %p31_p0 }
   0xf   : > { %p456_p12 = por %p67_p8, %p37_p3  ;;  %s87_s20 = sand.u32 1, %s384_s8  }
  0x10   : > { %s549_s18 = scalar_select %p452_p11, 1, 0 }
  0x11   : > { %s550_s19 = scalar_select %p456_p12, 1, 0 }
  0x12   : > { %s238_s21 = sshll.u32 %s388_s9, 7  ;;  %s237_s22 = sshll.u32 %s87_s20, 3 }
  0x13   : > { %s465_s25 = scalar_lea.hbm %s543_s0, %s238_s21  ;;  %s91_s26 = scalar_lea.vmem [#allocation2], %s237_s22 }
  0x14   : > { %s98_s27 = sshll.u32 %s91_s26, 4  ;;  %p469_p13 = pnand %p258_p10, %p441_p5  ;;  %s473_s27 = int_to_ptr.vmem [resolvable:$true] %s98_s27 }
  0x15   : > { %s88_s29 = scalar_lea.sflag [#allocation3], %s87_s20  ;;  %s296_s30 = scalar_lea.hbm %s465_s25, 128 }
  0x16   : > { %p297_p2 = scmp.ne.s32.totalorder %s465_s25, %s296_s30  ;;  %p298_p3 = pneg %p469_p13 }
  0x17   : > { %s301_s4 = scalar_lea.hbm %s543_s0, 256  ;;  %p302_p5 = scmp.lt.s32.totalorder %s465_s25, %s543_s0 }
  0x18   : > { %p299_p4 = pnand %p298_p3, %p297_p2  ;;  %p303_p8 = scmp.lt.s32.totalorder %s301_s4, %s296_s30 }
  0x1a   : > { %p300_p7 = pneg %p299_p4  ;;  %p304_p10 = por %p303_p8, %p302_p5 }
  0x1c   : > { %p305_p9 = pnand %p304_p10, %p300_p7 }
  0x1e   : > { %308 = shalt.err (!%p305_p9)
}
  0x1f   : > { %s309_s13 = scalar_lea.vmem %s473_s27, 128  ;;  %s390_s14 = smov [#allocation2]  }
  0x20   : > { %p310_p0 = scmp.ne.s32.totalorder %s473_s27, %s309_s13  ;;  %s314_s16 = sshll.u32 %s390_s14, 4  ;;  %s315_s16 = int_to_ptr.vmem [resolvable:$false] %s314_s16 }
  0x21   : > { %s316_s20 = scalar_lea.vmem %s315_s16, 256  ;;  %p317_p4 = scmp.lt.s32.totalorder %s473_s27, %s315_s16 }
  0x22   : > { %p312_p1 = pnand %p310_p0, %p298_p3  ;;  %p318_p12 = scmp.lt.s32.totalorder %s316_s20, %s309_s13 }
  0x24   : > { %p313_p2 = pneg %p312_p1  ;;  %p319_p11 = por %p318_p12, %p317_p4 }
  0x26   : > { %p320_p6 = pnand %p319_p11, %p313_p2 }
  0x28   : > { %323 = shalt.err (!%p320_p6)
}
  0x29   : > { %253 = dma.hbm_to_vmem [thread:$0]  (!%p469_p13), %s465_s25, 128, %s473_s27, %s88_s29  }
  0x2a   : > { %p552_p9 = scmp.lt.s32.totalorder %s388_s9, 3  ;;  %p553_p7 = scmp.ge.s32.totalorder %s388_s9, 1 }
  0x2c   : > { %p104_p0 = pnand %p553_p7, %p552_p9 }
  0x2d   : > { %s500_s21 = sand.u32 (!%p104_p0), 1, %s380_s7   ;;  %p554_p6 = scmp.ne.s32.totalorder (!%p104_p0), %s548_s17, 0 }
  0x2e   : > { %107 = sbr.rel (%p104_p0) target bundleno = 111 (0x6f), region = 24  ;;  %s240_s22 = sshll.u32 (!%p104_p0), %s500_s21, 3 }
  0x2f   : > { %s110_s23 = scalar_lea.sflag (!%p104_p0), [#allocation3], %s500_s21  ;;  %s113_s24 = scalar_lea.vmem (!%p104_p0), [#allocation2], %s240_s22 }
  0x33   : > { %367 = dma.done.wait (%p554_p6), %s110_s23, 128  }
  0x34   : > { %369 = vsyncadd (%p554_p6), %s110_s23, 4294967168  ;;  %v132_v0 = vld [vmem:[%s113_s24] sm:$0xff]  ;;  %s131_s17 = scalar_lea.vmem [#allocation5], %s240_s22  ;;  %s243_s26 = sshll.u32 %s423_s10, 7 }
  0x35   : > { %v133_v1 = vand.u32 2147483647, %v132_v0  ;;  %vm139_vm0 = vcmp.ge.f32.partialorder %v132_v0, 0.0  ;;  %s164_s25 = sshll.u32 %s131_s17, 4  ;;  %s162_s29 = scalar_lea.hbm %s544_s1, %s243_s26  ;;  %s165_s25 = int_to_ptr.vmem [resolvable:$true] %s164_s25 }
  0x36   : > { %s151_s30 = scalar_lea.sflag [#allocation4], %s500_s21  ;;  %s324_s2 = scalar_lea.vmem %s165_s25, 128 }
  0x37   : > { %v134_v2 = vsub.f32 0.0, %v133_v1  ;;  %p325_p11 = scmp.ne.s32.totalorder %s165_s25, %s324_s2  ;;  %p555_p12 = scmp.ne.s32.totalorder %s549_s18, 0 }
  0x38   : > { %s391_s3 = smov [#allocation5]  }
  0x39   : > { %v135_v3 = vmul.f32 1.442695, %v134_v2  ;;  %p326_p13 = pnand %p325_p11, %p555_p12  ;;  %s328_s4 = sshll.u32 %s391_s3, 4  ;;  %s329_s4 = int_to_ptr.vmem [resolvable:$false] %s328_s4 }
  0x3a   : > { %s330_s5 = scalar_lea.vmem %s329_s4, 256  ;;  %p331_p3 = scmp.lt.s32.totalorder %s165_s25, %s329_s4 }
  0x3b   : > { %292 = vpow2.f32 %v135_v3  ;;  %p327_p1 = pneg %p326_p13  ;;  %p332_p5 = scmp.lt.s32.totalorder %s330_s5, %s324_s2 }
  0x3d   : > { %p333_p8 = por %p332_p5, %p331_p3 }
  0x3f   : > { %p334_p10 = pnand %p333_p8, %p327_p1 }
  0x48   : > { %v293_v4 = vpop.eup %292 }
  0x49   : > { %v137_v5 = vmul.f32 %v293_v4, %v293_v4  ;;  %v138_v6 = vadd.f32 %v293_v4, %v293_v4 }
  0x4b   : > { %v140_v7 = vadd.f32 1.0, %v138_v6  ;;  %v141_v8 = vadd.f32 %v138_v6, %v137_v5  ;;  %v143_v9 = vadd.f32 %v137_v5, %v137_v5 }
  0x4d   : > { %v142_v10 = vsel %vm139_vm0, %v140_v7, %v141_v8  ;;  %v144_v11 = vsel %vm139_vm0, %v143_v9, 2.0 }
  0x4e   : > { %v145_v12 = vadd.f32 %v144_v11, %v142_v10 }
  0x50   : > { %294 = vrcp.f32 %v145_v12 }
  0x5d   : > { %v295_v13 = vpop.eup %294 }
  0x5e   : > { %v147_v14 = vmul.f32 %v295_v13, %v142_v10 }
  0x60   : > { %v148_v15 = vmul.f32 %v147_v14, %v132_v0 }
  0x62   : > { %149 = vst [vmem:[%s131_s17] sm:$0xff] %v148_v15 }
  0x63   : > { %337 = shalt.err (!%p334_p10)
}
  0x64   : > { %s338_s10 = scalar_lea.hbm %s162_s29, 128  ;;  %s342_s14 = scalar_lea.hbm %s544_s1, 256 }
  0x65   : > { %p339_p2 = scmp.ne.s32.totalorder %s162_s29, %s338_s10  ;;  %p343_p7 = scmp.lt.s32.totalorder %s162_s29, %s544_s1 }
  0x66   : > { %p344_p0 = scmp.lt.s32.totalorder %s342_s14, %s338_s10 }
  0x67   : > { %p340_p4 = pnand %p339_p2, %p555_p12 }
  0x68   : > { %p345_p6 = por %p344_p0, %p343_p7 }
  0x69   : > { %p341_p9 = pneg %p340_p4 }
  0x6b   : > { %p346_p11 = pnand %p345_p6, %p341_p9 }
  0x6d   : > { %349 = shalt.err (!%p346_p11)
}
  0x6e   : > { %248 = dma.vmem_to_hbm [thread:$0]  (%p555_p12), %s165_s25, 128, %s162_s29, %s151_s30  }
  0x6f PF: > { %s176_s21 = sand.u32 1, %s376_s6   ;;  %p556_p13 = scmp.ne.s32.totalorder %s550_s19, 0 }
  0x70   : > { %p557_p1 = scmp.ge.s32.totalorder %s388_s9, 2  ;;  %s177_s22 = scalar_lea.sflag [#allocation4], %s176_s21 }
  0x72   : > { %p255_p3 = pnand %p557_p1, %p556_p13 }
  0x74   : > { %p256_p5 = pneg %p255_p3 }
  0x76   : > { %371 = dma.done.wait (%p256_p5), %s177_s22, 128  }
  0x77   : > { %373 = vsyncadd (%p256_p5), %s177_s22, 4294967168  ;;  %p14_p8 = scmp.ge.s32.totalorder %s427_s12, 4   ;;  %s558_s6 = smov %s380_s7 }
  0x78   : > { %s559_s7 = smov %s384_s8  ;;  %s560_s8 = smov %s439_s15 }
  0x79   : > { %s561_s9 = smov %s427_s12  ;;  %16 = sbr.rel (!%p14_p8) target bundleno = 5 (0x5), region = 69 }
  0x7e   :  { %182 = vsyncpa [#allocation3], 1 }
  0x7f   :  { %184 = vsyncpa [#allocation3 + $0x1], 1 }
  0x80   :  { %185 = vsyncpa [#allocation4], 1 }
  0x81   :  { %187 = vsyncpa [#allocation4 + $0x1], 1 }

</bundles_post_ra>
